<compile_context>
chip_gen: v6e
topology: v6e:2x2x1
jax: 0.10.0
libtpu: 0.0.40
codegen_flags: <defaults>
</compile_context>

<pallas_src>
import jax
import jax.numpy as jnp
from jax.experimental import pallas as pl
from jax.experimental.pallas import tpu as pltpu

_LANES = 128
_SUBLANES = 8
_VMEM_BUDGET_BYTES = 4 * 1024 * 1024  # double-buffered in+out per grid step


# ----------------------------------------------------------------------------
# Kernel
# ----------------------------------------------------------------------------
def _padding_mask_kernel(x_ref, o_ref):
    # flag = where(x == 0, 1, 0) — one VPU compare + select per vreg, emitted
    # straight as float32 (no separate HBM cast pass, any input dtype).
    o_ref[...] = (x_ref[...] == 0).astype(jnp.float32)


# ----------------------------------------------------------------------------
# Tiling helper
# ----------------------------------------------------------------------------
def _choose_row_tile(rows_min, in_itemsize):
    """Pick (tile_rows, padded_rows).

    tile_rows is a multiple of 8 sized from a VMEM byte budget; padded_rows
    (>= rows_min) is the row count it tiles exactly.
    """
    # Double-buffered input block + float32 output block, per row of 128 lanes.
    per_row_bytes = 2 * (in_itemsize + 4) * _LANES
    tr_cap = max(
        _SUBLANES,
        (_VMEM_BUDGET_BYTES // per_row_bytes) // _SUBLANES * _SUBLANES,
    )

    if rows_min <= tr_cap:
        # Whole problem fits in 1-2 blocks.  Use 2 blocks when big enough so
        # both v7x TensorCores get work; tiny inputs stay a single block.
        nblocks = 2 if rows_min >= 2 * _SUBLANES else 1
        tr = -(-rows_min // nblocks)
        tr = -(-tr // _SUBLANES) * _SUBLANES
        return tr, tr * nblocks

    # Prefer a tile that divides rows_min exactly (no padding copy), as long
    # as the block stays large enough to amortize per-step overhead.
    if rows_min % _SUBLANES == 0:
        for tr in range(tr_cap, 63, -_SUBLANES):
            if rows_min % tr == 0:
                return tr, rows_min

    # Otherwise pad the row count up to a multiple of the capped tile.
    return tr_cap, -(-rows_min // tr_cap) * tr_cap


# ----------------------------------------------------------------------------
# Wrapper
# ----------------------------------------------------------------------------
def padding_mask(in_tensor):
    """PaddingMask.forward: (B, S) -> (B, 1, 1, S) float32 mask."""
    B, S = in_tensor.shape
    total = B * S

    rows_min = -(-total // _LANES)
    itemsize = jnp.dtype(in_tensor.dtype).itemsize
    tr, rows = _choose_row_tile(rows_min, itemsize)
    padded_total = rows * _LANES

    flat = in_tensor.reshape(-1)
    if padded_total != total:
        # Pad with a non-zero sentinel (its mask value is sliced off below).
        flat = jnp.pad(flat, (0, padded_total - total), constant_values=1)
    slab = flat.reshape(rows, _LANES)

    flags = pl.pallas_call(
        _padding_mask_kernel,
        out_shape=jax.ShapeDtypeStruct((rows, _LANES), jnp.float32),
        grid=(rows // tr,),
        in_specs=[pl.BlockSpec((tr, _LANES), lambda i: (i, 0))],
        out_specs=pl.BlockSpec((tr, _LANES), lambda i: (i, 0)),
        compiler_params=pltpu.CompilerParams(
            dimension_semantics=("parallel",),   # shard across v7x's 2 TCs
            vmem_limit_bytes=32 * 1024 * 1024,   # explicit, ample headroom
        ),
    )(slab)

    out = flags.reshape(-1)
    if padded_total != total:
        out = out[:total]
    # (total,) -> (B, 1, 1, S): pure metadata reshape, no data movement.
    return out.reshape(B, 1, 1, S)


# ----------------------------------------------------------------------------
# Main
# ----------------------------------------------------------------------------
if __name__ == "__main__":
    B, S = 2, 8

    key = jax.random.PRNGKey(0)
    ids = jax.random.randint(key, (B, S), 0, 40)
    ids = ids.at[:, -2:].set(0)          # guarantee a couple of pad (0) tokens
    in_tensor = ids.astype(jnp.float32)  # module compares against 0.0 (float)

    out = jax.block_until_ready(padding_mask(in_tensor))

    # Reference (pure JAX) check of the module semantics.
    ref = jnp.where(in_tensor == 0.0, 1.0, 0.0).reshape(B, 1, 1, S)

    assert out.shape == (B, 1, 1, S), out.shape
    assert out.dtype == jnp.float32
    assert bool(jnp.all(out == ref))
    assert bool(jnp.all(jnp.isfinite(out)))

    # Also exercise the native-int path and a multi-block grid.
    B2, S2 = 4, 640
    ids2 = jax.random.randint(jax.random.PRNGKey(1), (B2, S2), 0, 5)
    out2 = jax.block_until_ready(padding_mask(ids2))
    ref2 = jnp.where(ids2 == 0, 1.0, 0.0).reshape(B2, 1, 1, S2)
    assert out2.shape == (B2, 1, 1, S2)
    assert out2.dtype == jnp.float32
    assert bool(jnp.all(out2 == ref2))

    print("KERNEL_OK")
</pallas_src>

<mosaic_0001>
module attributes {stable_mosaic.version = 11 : i64} {
  func.func @_padding_mask_kernel(%arg0: i32, %arg1: memref<8x128xf32, #tpu.memory_space<vmem>>, %arg2: memref<8x128xf32, #tpu.memory_space<vmem>>) attributes {dimension_semantics = [#tpu.dimension_semantics<parallel>], iteration_bounds = array<i64: 1>, scalar_prefetch = 0 : i64, scratch_operands = 0 : i64, tpu.core_type = #tpu.core_type<tc>, window_params = [{transform_indices = @transform_0, window_bounds = array<i64: 8, 128>}, {transform_indices = @transform_1, window_bounds = array<i64: 8, 128>}]} {
    %c0 = arith.constant 0 : index
    %c0_0 = arith.constant 0 : index
    %0 = vector.load %arg1[%c0, %c0_0] : memref<8x128xf32, #tpu.memory_space<vmem>>, vector<8x128xf32>
    %cst = arith.constant 0.000000e+00 : f32
    %1 = vector.broadcast %cst : f32 to vector<8x128xf32>
    %2 = arith.cmpf oeq, %0, %1 : vector<8x128xf32>
    %3 = arith.extui %2 : vector<8x128xi1> to vector<8x128xi32>
    %4 = arith.sitofp %3 : vector<8x128xi32> to vector<8x128xf32>
    %c0_1 = arith.constant 0 : index
    %c0_2 = arith.constant 0 : index
    %5 = vector.load %arg2[%c0_1, %c0_2] : memref<8x128xf32, #tpu.memory_space<vmem>>, vector<8x128xf32>
    tpu.vector_store %arg2[%c0_1, %c0_2], %4 {strides = array<i32>} : memref<8x128xf32, #tpu.memory_space<vmem>>, vector<8x128xf32>,
    return
  }
  func.func @transform_0(%arg0: i32) -> (i32, i32) {
    %c0_i32 = arith.constant 0 : i32
    %c0_i32_0 = arith.constant 0 : i32
    return %arg0, %c0_i32 : i32, i32
  }
  func.func @transform_1(%arg0: i32) -> (i32, i32) {
    %c0_i32 = arith.constant 0 : i32
    %c0_i32_0 = arith.constant 0 : i32
    return %arg0, %c0_i32 : i32, i32
  }
}

</mosaic_0001>

<bundles_post_ra>
// kernel: tpu_custom_call.1
= control target key start
LH: loop header
LB: loop body
LE: loop exit
PB: predicated region body
PF: predicated region fallthrough
CT: control target
= control target key end

     0   :  { %6 = vsyncpa [#allocation3], 0  ;;  %s108_s0 = inlined_call_operand.hbm [shape: f32[8,128], index: 0, kind: input, shape index: {}]   ;;  %s109_s1 = inlined_call_operand.hbm [shape: f32[8,128], index: 1, kind: output, shape index: {}]  }
   0x1   :  { %7 = vsyncpa [#allocation4], 0  ;;  %s89_s6 = smov [#allocation2]  }
   0x2   :  { %s14_s7 = sshll.u32 %s89_s6, 4  ;;  %s15_s7 = int_to_ptr.vmem [resolvable:$true] %s14_s7 }
   0x3   :  { %s53_s8 = scalar_lea.vmem %s15_s7, 128  ;;  %p58_p1 = scmp.lt.s32.totalorder %s15_s7, %s15_s7 }
   0x4   :  { %p54_p0 = scmp.ne.s32.totalorder %s15_s7, %s53_s8  ;;  %p59_p2 = scmp.lt.s32.totalorder %s53_s8, %s53_s8 }
   0x6   :  { %p60_p3 = por %p59_p2, %p58_p1 }
   0x8   :  { %p61_p4 = pnand %p60_p3, %p54_p0 }
   0xa   :  { %64 = shalt.err (!%p61_p4)
}
   0xb   :  { %17 = dma.hbm_to_vmem [thread:$0]  %s108_s0, 128, %s15_s7, [#allocation3]  }
   0xc   :  { %85 = dma.done.wait [#allocation3], 128  }
   0xd   :  { %86 = vsyncadd [#allocation3], 4294967168  ;;  %s90_s11 = smov [#allocation5]   ;;  %v21_v0 = vld [vmem:[#allocation2] sm:$0xff]  ;;  %v91_v1 = vmov 0.0  }
   0xe   :  { %s32_s12 = sshll.u32 %s90_s11, 4  ;;  %vm22_vm0 = vcmp.eq.f32.partialorder %v21_v0, 0.0  ;;  %s33_s12 = int_to_ptr.vmem [resolvable:$true] %s32_s12 }
   0xf   :  { %v41_v2 = vsel %vm22_vm0, 1.0, %v91_v1  ;;  %s65_s13 = scalar_lea.vmem %s33_s12, 128  ;;  %p70_p6 = scmp.lt.s32.totalorder %s33_s12, %s33_s12 }
  0x10   :  { %25 = vst [vmem:[#allocation5] sm:$0xff] %v41_v2  ;;  %p66_p5 = scmp.ne.s32.totalorder %s33_s12, %s65_s13  ;;  %p71_p7 = scmp.lt.s32.totalorder %s65_s13, %s65_s13 }
  0x12   :  { %p72_p8 = por %p71_p7, %p70_p6 }
  0x14   :  { %p73_p9 = pnand %p72_p8, %p66_p5 }
  0x16   :  { %76 = shalt.err (!%p73_p9)
}
  0x17   :  { %35 = dma.vmem_to_hbm [thread:$0]  %s33_s12, 128, %s109_s1, [#allocation4]  }
  0x18   :  { %87 = dma.done.wait [#allocation4], 128  }
  0x19   :  { %88 = vsyncadd [#allocation4], 4294967168 }
  0x1a   :  { %39 = vsyncpa [#allocation3], 1 }
  0x1b   :  { %40 = vsyncpa [#allocation4], 1 }

</bundles_post_ra>
